<compile_context>
chip_gen: v6e
topology: v6e:2x2x1
jax: 0.10.0
libtpu: 0.0.40
codegen_flags: <defaults>
</compile_context>

<pallas_src>
import functools
import math

import numpy as np
import jax
import jax.numpy as jnp
from jax.experimental import pallas as pl
from jax.experimental.pallas import tpu as pltpu

_MIB = 1024 * 1024


def _round_up(x, m):
    return -(-x // m) * m


def _sublane_rows(dtype):
    """Sublane pack for the second-to-last dim: 8 for 32-bit, 16 for 16-bit dtypes."""
    return (32 // (np.dtype(dtype).itemsize * 8)) * 8


def _vmem_budget_bytes():
    """Per-generation scoped-VMEM budget with headroom for compiler scratch."""
    cap = 128 * _MIB
    try:
        info = pltpu.get_tpu_info()
        for name in ("vmem_capacity_bytes", "vmem_size_bytes", "vmem_bytes"):
            v = getattr(info, name, None)
            if v:
                cap = int(v)
                break
    except Exception:
        pass
    # Leave ~16 MiB for semaphores / compiler-internal scratch; never go below 32 MiB.
    return max(32 * _MIB, cap - 16 * _MIB)


def _pick_batch_tiling(batch, block_b, tb_cap, align):
    """Minimal padding to the sublane pack, then split into near-equal aligned tiles."""
    bp_min = _round_up(max(batch, 1), align)
    tb_max = max(align, min(_round_up(block_b, align), (tb_cap // align) * align))
    nb = math.ceil(bp_min / tb_max)
    # v7x megacore: a single-tile grid leaves the 2nd TensorCore idle.  Split into two
    # tiles when both halves stay >= 512 rows (no roofline penalty on v5e/v6e).
    if nb == 1 and bp_min >= 2 * 512:
        nb = 2
    tb = min(tb_max, _round_up(math.ceil(bp_min / nb), align))
    bp = nb * tb
    return nb, tb, bp


def _ae_kernel_resident(x_ref, we_ref, wd_ref, o_ref):
    # x_ref : (TB, D_in)    caller dtype (cast to bf16 here, hidden under DMA)
    # we_ref: (D_in, D_enc) bf16, VMEM-resident (constant index, single-buffered)
    # wd_ref: (D_enc, D_in) bf16, VMEM-resident
    xb = x_ref[...].astype(we_ref.dtype)
    h = jnp.dot(xb, we_ref[...], preferred_element_type=jnp.float32)
    y = jnp.dot(h.astype(wd_ref.dtype), wd_ref[...],
                preferred_element_type=jnp.float32)
    o_ref[...] = y.astype(o_ref.dtype)


def _ae_kernel_ktiled(x_ref, we_ref, wd_ref, o_ref, acc_ref):
    # Fallback when the two weights do not fit VMEM: tile the encoding dim K and
    # accumulate the second matmul:  y = sum_k (x @ We[:, k]) @ Wd[k, :].
    k = pl.program_id(1)

    @pl.when(k == 0)
    def _():
        acc_ref[...] = jnp.zeros_like(acc_ref)

    xb = x_ref[...].astype(we_ref.dtype)
    h = jnp.dot(xb, we_ref[...], preferred_element_type=jnp.float32)
    acc_ref[...] += jnp.dot(h.astype(wd_ref.dtype), wd_ref[...],
                            preferred_element_type=jnp.float32)

    @pl.when(k == pl.num_programs(1) - 1)
    def _():
        o_ref[...] = acc_ref[...].astype(o_ref.dtype)


def prepare_params(w_enc, w_dec, compute_dtype=jnp.bfloat16):
    """Pre-transpose PyTorch-layout weights ONCE (hoisted out of the forward).

    w_enc: (D_enc, D_in) -> we_t: (D_in, D_enc)
    w_dec: (D_in, D_enc) -> wd_t: (D_enc, D_in)
    """
    # TODO(synk): pad D_in to a multiple of 128 here (and slice in the wrapper) for
    # lane-dense stores when input_size % 128 != 0.
    we_t = jnp.asarray(w_enc.T, dtype=compute_dtype)
    wd_t = jnp.asarray(w_dec.T, dtype=compute_dtype)
    return we_t, wd_t


@functools.partial(jax.jit, static_argnames=("block_b", "out_dtype"))
def autoencoder_forward(x, we_t, wd_t, *, block_b=1024, out_dtype=None):
    """x: (B, D_in); we_t: (D_in, D_enc); wd_t: (D_enc, D_in) (pre-transposed, bf16)."""
    B, D_in = x.shape
    D_in2, D_enc = we_t.shape
    assert D_in2 == D_in and wd_t.shape == (D_enc, D_in)
    assert block_b >= 8

    out_dtype = np.dtype(x.dtype if out_dtype is None else out_dtype)
    x_bytes = np.dtype(x.dtype).itemsize
    o_bytes = out_dtype.itemsize
    w_bytes = np.dtype(we_t.dtype).itemsize

    budget = _vmem_budget_bytes()
    align = max(_sublane_rows(x.dtype), _sublane_rows(out_dtype))

    # Rough per-batch-row VMEM cost: double-buffered x & out tiles + f32/bf16 temps.
    per_row = (2 * D_in * x_bytes + 2 * D_in * o_bytes
               + 4 * D_in + 2 * D_in + 4 * D_enc + 2 * D_enc)

    resident_w = 2 * D_in * D_enc * w_bytes  # both weights, single-buffered
    use_ktiling = resident_w > budget // 2

    if not use_ktiling:
        # ---- weight-stationary path: both weights fully VMEM-resident ----
        tb_cap = max(align, (budget - resident_w) // per_row)
        nb, tb, Bp = _pick_batch_tiling(B, block_b, tb_cap, align)
        xp = jnp.pad(x, ((0, Bp - B), (0, 0))) if Bp != B else x

        y = pl.pallas_call(
            _ae_kernel_resident,
            out_shape=jax.ShapeDtypeStruct((Bp, D_in), out_dtype),
            grid_spec=pltpu.PrefetchScalarGridSpec(
                num_scalar_prefetch=0,
                grid=(nb,),
                in_specs=[
                    # x tile marches down the batch -> double-buffered / pipelined.
                    pl.BlockSpec((tb, D_in), lambda i: (i, 0)),
                    # Weights: constant block index -> DMA'd once; Buffered(1) halves
                    # their VMEM footprint (no second pipeline buffer needed).
                    pl.BlockSpec((D_in, D_enc), lambda i: (0, 0),
                                 pipeline_mode=pl.Buffered(buffer_count=1)),
                    pl.BlockSpec((D_enc, D_in), lambda i: (0, 0),
                                 pipeline_mode=pl.Buffered(buffer_count=1)),
                ],
                out_specs=pl.BlockSpec((tb, D_in), lambda i: (i, 0)),
            ),
            compiler_params=pltpu.CompilerParams(
                dimension_semantics=("parallel",),
                vmem_limit_bytes=budget,
            ),
            cost_estimate=pl.CostEstimate(
                flops=4 * Bp * D_in * D_enc,
                transcendentals=0,
                bytes_accessed=Bp * D_in * (x_bytes + o_bytes) + resident_w,
            ),
        )(xp, we_t, wd_t)
    else:
        # ---- fallback: weights too big for one TC's VMEM (e.g. v7x 64 MiB) ----
        # Stream K-slices of both weights and accumulate the 2nd matmul in f32 scratch.
        tk = (budget // 2) // (4 * D_in * w_bytes)  # 2 weight slices x 2 buffers
        tk = max(128, (tk // 128) * 128)
        tk = min(tk, _round_up(D_enc, 128))
        D_enc_p = _round_up(D_enc, tk)
        if D_enc_p != D_enc:  # zero-pad K: zeros contribute nothing to y
            we_t = jnp.pad(we_t, ((0, 0), (0, D_enc_p - D_enc)))
            wd_t = jnp.pad(wd_t, ((0, D_enc_p - D_enc), (0, 0)))
        nk = D_enc_p // tk

        w_stream = 2 * 2 * D_in * tk * w_bytes
        per_row_k = (2 * D_in * x_bytes + 2 * D_in * o_bytes
                     + 4 * D_in + 2 * D_in + 4 * tk + 2 * tk)
        tb_cap = max(align, (budget - w_stream) // per_row_k)
        nb, tb, Bp = _pick_batch_tiling(B, block_b, tb_cap, align)
        xp = jnp.pad(x, ((0, Bp - B), (0, 0))) if Bp != B else x

        y = pl.pallas_call(
            _ae_kernel_ktiled,
            out_shape=jax.ShapeDtypeStruct((Bp, D_in), out_dtype),
            grid_spec=pltpu.PrefetchScalarGridSpec(
                num_scalar_prefetch=0,
                grid=(nb, nk),
                in_specs=[
                    pl.BlockSpec((tb, D_in), lambda i, k: (i, 0)),
                    pl.BlockSpec((D_in, tk), lambda i, k: (0, k)),
                    pl.BlockSpec((tk, D_in), lambda i, k: (k, 0)),
                ],
                out_specs=pl.BlockSpec((tb, D_in), lambda i, k: (i, 0)),
                scratch_shapes=[pltpu.VMEM((tb, D_in), jnp.float32)],
            ),
            compiler_params=pltpu.CompilerParams(
                dimension_semantics=("parallel", "arbitrary"),
                vmem_limit_bytes=budget,
            ),
            cost_estimate=pl.CostEstimate(
                flops=4 * Bp * D_in * D_enc_p,
                transcendentals=0,
                bytes_accessed=(Bp * D_in * (x_bytes + o_bytes)
                                + nb * 2 * D_in * D_enc_p * w_bytes),
            ),
        )(xp, we_t, wd_t)

    return y[:B] if Bp != B else y


if __name__ == "__main__":
    # Small shapes consistent with the module: Linear(input_size, encoding_size).
    batch = 8
    input_size = 256
    encoding_size = 128

    key = jax.random.PRNGKey(0)
    kx, ke, kd = jax.random.split(key, 3)

    x = jax.random.normal(kx, (batch, input_size), dtype=jnp.float32)
    # PyTorch nn.Linear layout: weight is (out_features, in_features).
    w_enc = jax.random.normal(ke, (encoding_size, input_size), dtype=jnp.float32) * 0.02
    w_dec = jax.random.normal(kd, (input_size, encoding_size), dtype=jnp.float32) * 0.02

    # Hoisted weight preparation (transpose + bf16 cast), done once.
    we_t, wd_t = prepare_params(w_enc, w_dec)

    y = autoencoder_forward(x, we_t, wd_t)
    jax.block_until_ready(y)

    # Reference (torch semantics): y = (x @ W_enc.T) @ W_dec.T, in f32.
    y_ref = (x @ w_enc.T) @ w_dec.T
    assert y.shape == (batch, input_size)
    assert y.dtype == x.dtype
    # bf16 weights/activations with f32 accumulation -> loosened tolerance vs f32 ref.
    err = float(jnp.max(jnp.abs(y - y_ref)))
    assert jnp.allclose(y, y_ref, atol=1e-2, rtol=5e-2), err

    print("KERNEL_OK")
</pallas_src>

<mosaic_0001>
module attributes {stable_mosaic.version = 11 : i64} {
  func.func @_ae_kernel_resident(%arg0: i32, %arg1: memref<8x256xf32, #tpu.memory_space<vmem>>, %arg2: memref<256x128xbf16, #tpu.memory_space<vmem>>, %arg3: memref<128x256xbf16, #tpu.memory_space<vmem>>, %arg4: memref<8x256xf32, #tpu.memory_space<vmem>>) attributes {dimension_semantics = [#tpu.dimension_semantics<parallel>], iteration_bounds = array<i64: 1>, scalar_prefetch = 0 : i64, scratch_operands = 0 : i64, tpu.core_type = #tpu.core_type<tc>, window_params = [{transform_indices = @transform_0, window_bounds = array<i64: 8, 256>}, {pipeline_mode = #tpu.pipeline_mode<synchronous>, transform_indices = @transform_1, window_bounds = array<i64: 256, 128>}, {pipeline_mode = #tpu.pipeline_mode<synchronous>, transform_indices = @transform_2, window_bounds = array<i64: 128, 256>}, {transform_indices = @transform_3, window_bounds = array<i64: 8, 256>}]} {
    %c0 = arith.constant 0 : index
    %c0_0 = arith.constant 0 : index
    %0 = vector.load %arg1[%c0, %c0_0] : memref<8x256xf32, #tpu.memory_space<vmem>>, vector<8x256xf32>
    %1 = arith.truncf %0 : vector<8x256xf32> to vector<8x256xbf16>
    %c0_1 = arith.constant 0 : index
    %c0_2 = arith.constant 0 : index
    %2 = vector.load %arg2[%c0_1, %c0_2] : memref<256x128xbf16, #tpu.memory_space<vmem>>, vector<256x128xbf16>
    %cst = arith.constant dense<0.000000e+00> : vector<8x128xf32>
    %3 = tpu.matmul %1, %2, %cst {dimension_numbers = #tpu.dot_dimension_numbers<[1], [0], [0], [1], [0, 0, 1, 1], [], []>} : vector<8x256xbf16>, vector<256x128xbf16>, vector<8x128xf32> -> vector<8x128xf32>
    %4 = arith.truncf %3 : vector<8x128xf32> to vector<8x128xbf16>
    %c0_3 = arith.constant 0 : index
    %c0_4 = arith.constant 0 : index
    %5 = vector.load %arg3[%c0_3, %c0_4] : memref<128x256xbf16, #tpu.memory_space<vmem>>, vector<128x256xbf16>
    %cst_5 = arith.constant dense<0.000000e+00> : vector<8x256xf32>
    %6 = tpu.matmul %4, %5, %cst_5 {dimension_numbers = #tpu.dot_dimension_numbers<[1], [0], [0], [1], [0, 0, 1, 1], [], []>} : vector<8x128xbf16>, vector<128x256xbf16>, vector<8x256xf32> -> vector<8x256xf32>
    %c0_6 = arith.constant 0 : index
    %c0_7 = arith.constant 0 : index
    %7 = vector.load %arg4[%c0_6, %c0_7] : memref<8x256xf32, #tpu.memory_space<vmem>>, vector<8x256xf32>
    tpu.vector_store %arg4[%c0_6, %c0_7], %6 {strides = array<i32>} : memref<8x256xf32, #tpu.memory_space<vmem>>, vector<8x256xf32>,
    return
  }
  func.func @transform_0(%arg0: i32) -> (i32, i32) {
    %c0_i32 = arith.constant 0 : i32
    %c0_i32_0 = arith.constant 0 : i32
    return %arg0, %c0_i32 : i32, i32
  }
  func.func @transform_1(%arg0: i32) -> (i32, i32) {
    %c0_i32 = arith.constant 0 : i32
    %c0_i32_0 = arith.constant 0 : i32
    %c0_i32_1 = arith.constant 0 : i32
    return %c0_i32, %c0_i32_0 : i32, i32
  }
  func.func @transform_2(%arg0: i32) -> (i32, i32) {
    %c0_i32 = arith.constant 0 : i32
    %c0_i32_0 = arith.constant 0 : i32
    %c0_i32_1 = arith.constant 0 : i32
    return %c0_i32, %c0_i32_0 : i32, i32
  }
  func.func @transform_3(%arg0: i32) -> (i32, i32) {
    %c0_i32 = arith.constant 0 : i32
    %c0_i32_0 = arith.constant 0 : i32
    return %arg0, %c0_i32 : i32, i32
  }
}

</mosaic_0001>

<bundles_post_ra>
// kernel: autoencoder_forward.1
= control target key start
LH: loop header
LB: loop body
LE: loop exit
PB: predicated region body
PF: predicated region fallthrough
CT: control target
= control target key end

     0   :  { %8 = vsyncpa [#allocation3], 0  ;;  %s613_s0 = inlined_call_operand.hbm [shape: f32[8,256], index: 0, kind: input, shape index: {}]   ;;  %s614_s1 = inlined_call_operand.hbm [shape: bf16[256,128], index: 1, kind: input, shape index: {}]   ;;  %s615_s2 = inlined_call_operand.hbm [shape: bf16[128,256], index: 2, kind: input, shape index: {}]   ;;  %s616_s3 = inlined_call_operand.hbm [shape: f32[8,256], index: 3, kind: output, shape index: {}]  }
   0x1   :  { %9 = vsyncpa [#allocation6], 0 }
   0x2   :  { %10 = vsyncpa [#allocation4], 0  ;;  %s572_s12 = smov [#allocation5]  }
   0x3   :  { %s26_s13 = sshll.u32 %s572_s12, 4  ;;  %s27_s13 = int_to_ptr.vmem [resolvable:$true] %s26_s13 }
   0x4   :  { %s494_s14 = scalar_lea.vmem %s27_s13, 2048  ;;  %p499_p1 = scmp.lt.s32.totalorder %s27_s13, %s27_s13 }
   0x5   :  { %p495_p0 = scmp.ne.s32.totalorder %s27_s13, %s494_s14  ;;  %p500_p2 = scmp.lt.s32.totalorder %s494_s14, %s494_s14 }
   0x7   :  { %p501_p3 = por %p500_p2, %p499_p1 }
   0x9   :  { %p502_p4 = pnand %p501_p3, %p495_p0 }
   0xb   :  { %505 = shalt.err (!%p502_p4)
}
   0xc   :  { %s573_s15 = smov 64   ;;  %s574_s16 = smov 4  }
   0xd   :  { %32 = dma.hbm_to_vmem [thread:$0]  %s614_s1, 2048, %s27_s13, [#allocation6], %s573_s15, %s573_s15, %s574_s16  }
   0xe   :  { %s575_s19 = smov [#allocation2]   ;;  %s576_s21 = smov [#allocation7]  }
   0xf   :  { %s17_s20 = sshll.u32 %s575_s19, 4  ;;  %s38_s22 = sshll.u32 %s576_s21, 4  ;;  %s18_s20 = int_to_ptr.vmem [resolvable:$true] %s17_s20  ;;  %s39_s22 = int_to_ptr.vmem [resolvable:$true] %s38_s22 }
  0x10   :  { %s514_s23 = scalar_lea.vmem %s18_s20, 256  ;;  %p519_p6 = scmp.lt.s32.totalorder %s18_s20, %s18_s20 }
  0x11   :  { %p515_p5 = scmp.ne.s32.totalorder %s18_s20, %s514_s23  ;;  %p520_p7 = scmp.lt.s32.totalorder %s514_s23, %s514_s23 }
  0x13   :  { %p521_p8 = por %p520_p7, %p519_p6 }
  0x15   :  { %p522_p9 = pnand %p521_p8, %p515_p5 }
  0x17   :  { %525 = shalt.err (!%p522_p9)
}
  0x18   :  { %20 = dma.hbm_to_vmem [thread:$0]  %s613_s0, 256, %s18_s20, [#allocation3]  }
  0x19   :  { %s534_s26 = scalar_lea.vmem %s39_s22, 2048  ;;  %p539_p11 = scmp.lt.s32.totalorder %s39_s22, %s39_s22 }
  0x1a   :  { %p535_p10 = scmp.ne.s32.totalorder %s39_s22, %s534_s26  ;;  %p540_p12 = scmp.lt.s32.totalorder %s534_s26, %s534_s26 }
  0x1c   :  { %p541_p13 = por %p540_p12, %p539_p11 }
  0x1e   :  { %p542_p0 = pnand %p541_p13, %p535_p10 }
  0x20   :  { %545 = shalt.err (!%p542_p0)
}
  0x21   :  { %s577_s1 = smov 128   ;;  %s578_s27 = smov 8  }
  0x22   :  { %44 = dma.hbm_to_vmem [thread:$0]  %s615_s2, 2048, %s39_s22, [#allocation6], %s577_s1, %s577_s1, %s578_s27  }
  0x23   :  { %566 = dma.done.wait [#allocation3], 256  }
  0x24   :  { %567 = vsyncadd [#allocation3], 4294967040 }
  0x25   :  { %568 = dma.done.wait [#allocation6], 4096  }
  0x26   :  { %569 = vsyncadd [#allocation6], 4294963200  ;;  %v446_v0 = vld [vmem:[#allocation5 + $0x78] sm:$0xff]   ;;  %v448_v2 = vld [vmem:[#allocation5 + $0x70] sm:$0xff]   ;;  %v579_v36 = vmov 0   ;;  %s580_s0 = smov [#allocation8]  }
  0x27   :  { %v447_v1 = vld [vmem:[#allocation5 + $0x38] sm:$0xff]   ;;  %415 = vmatprep.subr.bf16.mxu0 %v446_v0  ;;  %v449_v3 = vld [vmem:[#allocation5 + $0x30] sm:$0xff]   ;;  %v450_v4 = vld [vmem:[#allocation5 + $0x68] sm:$0xff]   ;;  %356 = vmatprep.mubr.bf16.mxu1 %v579_v36  ;;  %s373_s2 = sshll.u32 %s580_s0, 4  ;;  %s374_s2 = int_to_ptr.vmem [resolvable:$true] %s373_s2 }
  0x28   :  { %416 = vmatpush3.bf16.msra.mxu0 %v447_v1  ;;  %v451_v5 = vld [vmem:[#allocation5 + $0x28] sm:$0xff]   ;;  %v452_v6 = vld [vmem:[#allocation5 + $0x60] sm:$0xff]   ;;  %v454_v8 = vld [vmem:[#allocation5 + $0x58] sm:$0xff]   ;;  %s546_s30 = scalar_lea.vmem %s374_s2, 256  ;;  %p551_p2 = scmp.lt.s32.totalorder %s374_s2, %s374_s2 }
  0x29   :  { %417 = vmatprep.subr.bf16.mxu0 %v448_v2  ;;  %v453_v7 = vld [vmem:[#allocation5 + $0x20] sm:$0xff]   ;;  %v455_v9 = vld [vmem:[#allocation5 + $0x18] sm:$0xff]   ;;  %v456_v10 = vld [vmem:[#allocation5 + $0x50] sm:$0xff]   ;;  %p547_p1 = scmp.ne.s32.totalorder %s374_s2, %s546_s30  ;;  %p552_p3 = scmp.lt.s32.totalorder %s546_s30, %s546_s30 }
  0x2a   :  { %v56_v11 = vld [vmem:[#allocation2 + $0x8] sm:$0xff]  ;;  %v465_v15 = vld [vmem:[#allocation7 + $0x64] ss:$8 sps:$4 sm:$0xff]   ;;  %v457_v16 = vld [vmem:[#allocation5 + $0x10] sm:$0xff]  }
  0x2b   :  { %v58_v12 = vpack.c.bf16 %v56_v11, %v56_v11  ;;  %v462_v13 = vld [vmem:[#allocation7 + $0x74] ss:$8 sps:$4 sm:$0xff]   ;;  %v464_v14 = vld [vmem:[#allocation7 + $0x70] ss:$8 sps:$4 sm:$0xff]   ;;  %v458_v17 = vld [vmem:[#allocation5 + $0x48] sm:$0xff]   ;;  %p553_p4 = por %p552_p3, %p551_p2 }
  0x2c   :  { %418 = vmatpush3.bf16.msra.mxu0 %v449_v3  ;;  %324 = vmatprep.subr.bf16.mxu1 %v462_v13  ;;  %v467_v18 = vld [vmem:[#allocation7 + $0x60] ss:$8 sps:$4 sm:$0xff]   ;;  %v468_v19 = vld [vmem:[#allocation7 + $0x54] ss:$8 sps:$4 sm:$0xff]   ;;  %v470_v22 = vld [vmem:[#allocation7 + $0x50] ss:$8 sps:$4 sm:$0xff]  }
  0x2d   :  { %419 = vmatprep.subr.bf16.mxu0 %v450_v4  ;;  %219 = vmatprep.mubr.bf16.mxu0 %v58_v12  ;;  %v459_v20 = vld [vmem:[#allocation5 + $0x8] sm:$0xff]   ;;  %v460_v21 = vld [vmem:[#allocation5 + $0x40] sm:$0xff]   ;;  %v55_v25 = vld [vmem:[#allocation2] sm:$0xff]  ;;  %p554_p5 = pnand %p553_p4, %p547_p1 }
  0x2e   :  { %325 = vmatpush1.bf16.msra.mxu1 %v464_v14  ;;  %v471_v23 = vld [vmem:[#allocation7 + $0x44] ss:$8 sps:$4 sm:$0xff]   ;;  %v473_v26 = vld [vmem:[#allocation7 + $0x40] ss:$8 sps:$4 sm:$0xff]   ;;  %v57_v27 = vpack.c.bf16 %v55_v25, %v55_v25  ;;  %v474_v28 = vld [vmem:[#allocation7 + $0x34] ss:$8 sps:$4 sm:$0xff]  }
  0x2f   :  { %326 = vmatprep.subr.bf16.mxu1 %v465_v15  ;;  %v461_v24 = vld [vmem:[#allocation5] sm:$0xff]   ;;  %v476_v29 = vld [vmem:[#allocation7 + $0x30] ss:$8 sps:$4 sm:$0xff]   ;;  %v480_v32 = vld [vmem:[#allocation7 + $0x14] ss:$8 sps:$4 sm:$0xff]  }
  0x30   :  { %420 = vmatpush3.bf16.msra.mxu0 %v451_v5  ;;  %v477_v30 = vld [vmem:[#allocation7 + $0x24] ss:$8 sps:$4 sm:$0xff]   ;;  %v479_v31 = vld [vmem:[#allocation7 + $0x20] ss:$8 sps:$4 sm:$0xff]   ;;  %v482_v33 = vld [vmem:[#allocation7 + $0x10] ss:$8 sps:$4 sm:$0xff]  }
  0x31   :  { %421 = vmatprep.subr.bf16.mxu0 %v452_v6  ;;  %v483_v34 = vld [vmem:[#allocation7 + $0x4] ss:$8 sps:$4 sm:$0xff]   ;;  %v485_v35 = vld [vmem:[#allocation7] ss:$8 sps:$4 sm:$0xff]  }
  0x32   :  { %327 = vmatpush1.bf16.msra.mxu1 %v467_v18 }
  0x33   :  { %328 = vmatprep.subr.bf16.mxu1 %v468_v19 }
  0x34   :  { %422 = vmatpush3.bf16.msra.mxu0 %v453_v7 }
  0x35   :  { %423 = vmatprep.subr.bf16.mxu0 %v454_v8 }
  0x36   :  { %329 = vmatpush1.bf16.msra.mxu1 %v470_v22 }
  0x37   :  { %330 = vmatprep.subr.bf16.mxu1 %v471_v23 }
  0x38   :  { %424 = vmatpush3.bf16.msra.mxu0 %v455_v9 }
  0x39   :  { %425 = vmatprep.subr.bf16.mxu0 %v456_v10 }
  0x3a   :  { %331 = vmatpush1.bf16.msra.mxu1 %v473_v26 }
  0x3b   :  { %332 = vmatprep.subr.bf16.mxu1 %v474_v28 }
  0x3c   :  { %426 = vmatpush3.bf16.msra.mxu0 %v457_v16 }
  0x3d   :  { %427 = vmatprep.subr.bf16.mxu0 %v458_v17 }
  0x3e   :  { %333 = vmatpush1.bf16.msra.mxu1 %v476_v29 }
  0x3f   :  { %334 = vmatprep.subr.bf16.mxu1 %v477_v30 }
  0x40   :  { %428 = vmatpush3.bf16.msra.mxu0 %v459_v20 }
  0x41   :  { %429 = vmatprep.subr.bf16.mxu0 %v460_v21 }
  0x42   :  { %335 = vmatpush1.bf16.msra.mxu1 %v479_v31 }
  0x43   :  { %336 = vmatprep.subr.bf16.mxu1 %v480_v32 }
  0x44   :  { %430 = vmatpush3.bf16.msra.mxu0 %v461_v24 }
  0x46   :  { %337 = vmatpush1.bf16.msra.mxu1 %v482_v33 }
  0x47   :  { %220 = vmatmul.mubr.bf16.vlgmr.msra.gmra.mxu0 %v57_v27  ;;  %338 = vmatprep.subr.bf16.mxu1 %v483_v34 }
  0x4a   :  { %339 = vmatpush1.bf16.msra.mxu1 %v485_v35 }
 0x107   :  { %v431_v37 = vpop.f32.mrf.mxu0 }
 0x109   :  { %v432_v38 = vpop.f32.mrf.mxu0 }
 0x10a   :  { %v433_v39 = vadd.f32 %v432_v38, %v431_v37 }
 0x10b   :  { %v434_v40 = vpop.f32.mrf.mxu0 }
 0x10c   :  { %v227_v41 = vpack.c.bf16 %v433_v39, %v433_v39 }
 0x10d   :  { %v435_v42 = vpop.f32.mrf.mxu0 }
 0x10e   :  { %357 = vmatmul.mubr.bf16.vlgmr.msra.gmra.mxu1 %v227_v41 }
 0x1ce   :  { %v358_v43 = vpop.f32.mrf.mxu1 }
 0x1cf   :  { %365 = vst [vmem:[#allocation8] sm:$0xff] %v358_v43 }
 0x1d0   :  { %v360_v44 = vpop.f32.mrf.mxu1 }
 0x1d1   :  { %366 = vst [vmem:[#allocation8 + $0x8] sm:$0xff] %v360_v44 }
 0x1d2   :  { %v362_v45 = vpop.f32.mrf.mxu1 }
 0x1d3   :  { %557 = shalt.err (!%p554_p5)
}
 0x1d4   :  { %376 = dma.vmem_to_hbm [thread:$0]  %s374_s2, 256, %s616_s3, [#allocation4]   ;;  %v363_v46 = vpop.f32.mrf.mxu1 }
 0x1d5   :  { %570 = dma.done.wait [#allocation4], 256  }
 0x1d6   :  { %571 = vsyncadd [#allocation4], 4294967040 }
 0x1d7   :  { %380 = vsyncpa [#allocation3], 1 }
 0x1d8   :  { %381 = vsyncpa [#allocation6], 1 }
 0x1d9   :  { %382 = vsyncpa [#allocation4], 1 }

</bundles_post_ra>
